<compile_context>
chip_gen: v5e
topology: v5e:2x2
jax: 0.10.0
libtpu: 0.0.40
codegen_flags: <defaults>
</compile_context>

<pallas_src>
import numpy as np
import jax
import jax.numpy as jnp
from jax import lax
from jax.experimental import pallas as pl
from jax.experimental.pallas import tpu as pltpu

BN_EPS = 1e-5


# -------------------------- Pallas kernel --------------------------

def _pagfm_kernel(x_ref, y_ref, a_ref, wx_ref, sx_ref, bx_ref,
                  wy_ref, sy_ref, by_ref, o_ref):
    x = x_ref[0]          # (Cin, TILE)    high-res x slab, channel-major
    y = y_ref[0]          # (Cin, HyWy)    full low-res y, channel-major
    a = a_ref[...]        # (HyWy, TILE)   bilinear-interp matrix slab

    # f_x: 1x1 conv (no bias) + folded BN  (channel-mixing matmul on the MXU)
    x_k = jnp.dot(wx_ref[...], x, preferred_element_type=jnp.float32)
    x_k = x_k * sx_ref[...] + bx_ref[...]                          # (Cmid, TILE)

    # f_y at low resolution, then bilinear upsample via the interp matrix
    y_q = jnp.dot(wy_ref[...], y, preferred_element_type=jnp.float32)
    y_q = y_q * sy_ref[...] + by_ref[...]                          # (Cmid, HyWy)
    y_q_up = jnp.dot(y_q, a, preferred_element_type=jnp.float32)   # (Cmid, TILE)

    # sim_map = sigmoid(sum_c x_k * y_q_up)  (channel axis reduce = cheap adds)
    s = jnp.sum(x_k * y_q_up, axis=0, keepdims=True)               # (1, TILE)
    sim = 1.0 / (1.0 + jnp.exp(-s))                                # exp -> EUP

    # upsample raw y and blend:  out = (1 - sim) * x + sim * y_up
    y_up = jnp.dot(y, a, preferred_element_type=jnp.float32)       # (Cin, TILE)
    o_ref[0] = (1.0 - sim) * x + sim * y_up


# -------------------------- wrapper (glue) --------------------------

def _interp_matrix_1d(out_size, in_size):
    """1-D bilinear resize (PyTorch align_corners=False) as a dense matrix."""
    A = np.zeros((out_size, in_size), dtype=np.float32)
    scale = in_size / out_size
    for i in range(out_size):
        src = max((i + 0.5) * scale - 0.5, 0.0)
        i0 = min(int(np.floor(src)), in_size - 1)
        i1 = min(i0 + 1, in_size - 1)
        l1 = src - i0
        A[i, i0] += 1.0 - l1
        A[i, i1] += l1
    return A


def pagfm_forward(x_nchw, y_nchw, kp, tile_hw=128):
    """PagFM forward, defaults (after_relu=False, with_channel=False).
    x_nchw: (B, Cin, H, W) float32 (high-res); y_nchw: (B, Cin, Hy, Wy)."""
    B, Cin, H, W = x_nchw.shape
    _, _, Hy, Wy = y_nchw.shape
    HW, HyWy = H * W, Hy * Wy
    assert HW % tile_hw == 0 and tile_hw % 128 == 0
    Cmid = kp["wx"].shape[0]
    n_tiles = HW // tile_hw

    # channel-major, spatial flattened -> lane-dense; these reshapes are free.
    x2 = x_nchw.reshape(B, Cin, HW)
    y2 = y_nchw.reshape(B, Cin, HyWy)

    # (Hy*Wy, H*W) bilinear matrix = kron(A_h, A_w)^T, built once on host.
    a_k = jnp.asarray(
        np.kron(_interp_matrix_1d(H, Hy), _interp_matrix_1d(W, Wy)).T)

    out = pl.pallas_call(
        _pagfm_kernel,
        out_shape=jax.ShapeDtypeStruct((B, Cin, HW), jnp.float32),
        grid=(B, n_tiles),
        in_specs=[
            pl.BlockSpec((1, Cin, tile_hw), lambda b, t: (b, 0, t)),   # x slab
            pl.BlockSpec((1, Cin, HyWy),    lambda b, t: (b, 0, 0)),   # y (low-res)
            pl.BlockSpec((HyWy, tile_hw),   lambda b, t: (0, t)),      # interp matrix slab
            pl.BlockSpec((Cmid, Cin),       lambda b, t: (0, 0)),      # f_x conv weight
            pl.BlockSpec((Cmid, 1),         lambda b, t: (0, 0)),      # f_x bn scale
            pl.BlockSpec((Cmid, 1),         lambda b, t: (0, 0)),      # f_x bn bias
            pl.BlockSpec((Cmid, Cin),       lambda b, t: (0, 0)),      # f_y conv weight
            pl.BlockSpec((Cmid, 1),         lambda b, t: (0, 0)),      # f_y bn scale
            pl.BlockSpec((Cmid, 1),         lambda b, t: (0, 0)),      # f_y bn bias
        ],
        out_specs=pl.BlockSpec((1, Cin, tile_hw), lambda b, t: (b, 0, t)),
        compiler_params=pltpu.CompilerParams(
            dimension_semantics=("parallel", "parallel"),
            vmem_limit_bytes=32 * 1024 * 1024),
    )(x2, y2, a_k, kp["wx"], kp["bnx_s"], kp["bnx_b"],
      kp["wy"], kp["bny_s"], kp["bny_b"])

    # TODO(synk): optional with_channel=True (extra 1x1 conv `up` on x_k*y_q) and
    # after_relu=True pre-activation branches are not implemented (defaults used).
    return out.reshape(B, Cin, H, W)


# -------------------------- params (deterministic) --------------------------

def make_params(key, in_channels, mid_channels):
    ks = jax.random.split(key, 10)

    def fold_bn(gamma, beta, mean, var):
        s = gamma / jnp.sqrt(var + BN_EPS)
        return s, beta - mean * s

    # f_x = Conv2d(Cin, Cmid, 1, bias=False) + BN(Cmid)
    fx_w = 0.3 * jax.random.normal(ks[0], (mid_channels, in_channels, 1, 1))
    gx = jax.random.uniform(ks[1], (mid_channels,), minval=0.5, maxval=1.5)
    bx = 0.1 * jax.random.normal(ks[2], (mid_channels,))
    mx = 0.1 * jax.random.normal(ks[3], (mid_channels,))
    vx = jax.random.uniform(ks[4], (mid_channels,), minval=0.5, maxval=1.5)
    sx, bbx = fold_bn(gx, bx, mx, vx)

    # f_y = Conv2d(Cin, Cmid, 1, bias=False) + BN(Cmid)
    fy_w = 0.3 * jax.random.normal(ks[5], (mid_channels, in_channels, 1, 1))
    gy = jax.random.uniform(ks[6], (mid_channels,), minval=0.5, maxval=1.5)
    by = 0.1 * jax.random.normal(ks[7], (mid_channels,))
    my = 0.1 * jax.random.normal(ks[8], (mid_channels,))
    vy = jax.random.uniform(ks[9], (mid_channels,), minval=0.5, maxval=1.5)
    sy, bby = fold_bn(gy, by, my, vy)

    raw = dict(fx_w=fx_w, sx=sx, bbx=bbx, fy_w=fy_w, sy=sy, bby=bby)

    kernel_params = dict(
        wx=fx_w[:, :, 0, 0].astype(jnp.float32),        # (Cmid, Cin)
        bnx_s=sx.reshape(-1, 1).astype(jnp.float32),    # (Cmid, 1)
        bnx_b=bbx.reshape(-1, 1).astype(jnp.float32),
        wy=fy_w[:, :, 0, 0].astype(jnp.float32),
        bny_s=sy.reshape(-1, 1).astype(jnp.float32),
        bny_b=bby.reshape(-1, 1).astype(jnp.float32),
    )
    return raw, kernel_params


# -------------------------- pure-JAX reference --------------------------

def _torch_bilinear_resize(img, out_h, out_w):
    """NCHW bilinear resize with PyTorch align_corners=False semantics."""
    _, _, in_h, in_w = img.shape

    def coords(out_size, in_size):
        scale = in_size / out_size
        src = jnp.maximum(
            (jnp.arange(out_size, dtype=jnp.float32) + 0.5) * scale - 0.5, 0.0)
        i0 = jnp.clip(jnp.floor(src).astype(jnp.int32), 0, in_size - 1)
        i1 = jnp.minimum(i0 + 1, in_size - 1)
        l1 = src - i0.astype(jnp.float32)
        return i0, i1, 1.0 - l1, l1

    h0, h1, hw0, hw1 = coords(out_h, in_h)
    w0, w1, ww0, ww1 = coords(out_w, in_w)
    rows = (img[:, :, h0, :] * hw0[None, None, :, None]
            + img[:, :, h1, :] * hw1[None, None, :, None])
    return (rows[:, :, :, w0] * ww0[None, None, None, :]
            + rows[:, :, :, w1] * ww1[None, None, None, :])


def reference_forward(x, y, rp):
    def conv_bn(t, w, s, b):
        t = lax.conv_general_dilated(t, w, (1, 1), [(0, 0), (0, 0)],
                                     dimension_numbers=("NCHW", "OIHW", "NCHW"))
        return t * s[None, :, None, None] + b[None, :, None, None]

    H, W = x.shape[2], x.shape[3]
    y_q = conv_bn(y, rp["fy_w"], rp["sy"], rp["bby"])
    y_q = _torch_bilinear_resize(y_q, H, W)
    x_k = conv_bn(x, rp["fx_w"], rp["sx"], rp["bbx"])
    sim = 1.0 / (1.0 + jnp.exp(-jnp.sum(x_k * y_q, axis=1, keepdims=True)))
    y_up = _torch_bilinear_resize(y, H, W)
    return (1.0 - sim) * x + sim * y_up


# -------------------------- main --------------------------

if __name__ == "__main__":
    B, Cin, Cmid = 2, 4, 8
    H, W, Hy, Wy = 16, 16, 8, 8           # y is the low-resolution branch

    key = jax.random.PRNGKey(0)
    kx, ky, kparam = jax.random.split(key, 3)
    x = jax.random.normal(kx, (B, Cin, H, W), dtype=jnp.float32)
    y = jax.random.normal(ky, (B, Cin, Hy, Wy), dtype=jnp.float32)

    raw_params, kernel_params = make_params(kparam, Cin, Cmid)

    out = jax.block_until_ready(pagfm_forward(x, y, kernel_params))

    ref = jax.block_until_ready(reference_forward(x, y, raw_params))
    np.testing.assert_allclose(np.asarray(out), np.asarray(ref),
                               rtol=1e-3, atol=1e-3)
    assert out.shape == (B, Cin, H, W)
    print("KERNEL_OK")
</pallas_src>

<mosaic_0001>
module attributes {stable_mosaic.version = 11 : i64} {
  func.func @_pagfm_kernel(%arg0: i32, %arg1: i32, %arg2: memref<1x4x128xf32, #tpu.memory_space<vmem>>, %arg3: memref<1x4x64xf32, #tpu.memory_space<vmem>>, %arg4: memref<64x128xf32, #tpu.memory_space<vmem>>, %arg5: memref<8x4xf32, #tpu.memory_space<vmem>>, %arg6: memref<8x1xf32, #tpu.memory_space<vmem>>, %arg7: memref<8x1xf32, #tpu.memory_space<vmem>>, %arg8: memref<8x4xf32, #tpu.memory_space<vmem>>, %arg9: memref<8x1xf32, #tpu.memory_space<vmem>>, %arg10: memref<8x1xf32, #tpu.memory_space<vmem>>, %arg11: memref<1x4x128xf32, #tpu.memory_space<vmem>>) attributes {dimension_semantics = [#tpu.dimension_semantics<parallel>, #tpu.dimension_semantics<parallel>], iteration_bounds = array<i64: 2, 2>, scalar_prefetch = 0 : i64, scratch_operands = 0 : i64, tpu.core_type = #tpu.core_type<tc>, window_params = [{transform_indices = @transform_0, window_bounds = array<i64: 1, 4, 128>}, {transform_indices = @transform_1, window_bounds = array<i64: 1, 4, 64>}, {transform_indices = @transform_2, window_bounds = array<i64: 64, 128>}, {pipeline_mode = #tpu.pipeline_mode<synchronous>, transform_indices = @transform_3, window_bounds = array<i64: 8, 4>}, {pipeline_mode = #tpu.pipeline_mode<synchronous>, transform_indices = @transform_4, window_bounds = array<i64: 8, 1>}, {pipeline_mode = #tpu.pipeline_mode<synchronous>, transform_indices = @transform_5, window_bounds = array<i64: 8, 1>}, {pipeline_mode = #tpu.pipeline_mode<synchronous>, transform_indices = @transform_6, window_bounds = array<i64: 8, 4>}, {pipeline_mode = #tpu.pipeline_mode<synchronous>, transform_indices = @transform_7, window_bounds = array<i64: 8, 1>}, {pipeline_mode = #tpu.pipeline_mode<synchronous>, transform_indices = @transform_8, window_bounds = array<i64: 8, 1>}, {transform_indices = @transform_9, window_bounds = array<i64: 1, 4, 128>}]} {
    %c0 = arith.constant 0 : index
    %c0_0 = arith.constant 0 : index
    %c0_1 = arith.constant 0 : index
    %0 = vector.load %arg2[%c0, %c0_0, %c0_1] : memref<1x4x128xf32, #tpu.memory_space<vmem>>, vector<1x4x128xf32>
    %1 = vector.shape_cast %0 : vector<1x4x128xf32> to vector<4x128xf32>
    %c0_2 = arith.constant 0 : index
    %c0_3 = arith.constant 0 : index
    %c0_4 = arith.constant 0 : index
    %2 = vector.load %arg3[%c0_2, %c0_3, %c0_4] : memref<1x4x64xf32, #tpu.memory_space<vmem>>, vector<1x4x64xf32>
    %3 = vector.shape_cast %2 : vector<1x4x64xf32> to vector<4x64xf32>
    %c0_5 = arith.constant 0 : index
    %c0_6 = arith.constant 0 : index
    %4 = vector.load %arg4[%c0_5, %c0_6] : memref<64x128xf32, #tpu.memory_space<vmem>>, vector<64x128xf32>
    %c0_7 = arith.constant 0 : index
    %c0_8 = arith.constant 0 : index
    %5 = vector.load %arg5[%c0_7, %c0_8] : memref<8x4xf32, #tpu.memory_space<vmem>>, vector<8x4xf32>
    %cst = arith.constant dense<0.000000e+00> : vector<8x128xf32>
    %6 = tpu.matmul %5, %1, %cst {dimension_numbers = #tpu.dot_dimension_numbers<[1], [0], [0], [1], [0, 0, 1, 1], [], []>} : vector<8x4xf32>, vector<4x128xf32>, vector<8x128xf32> -> vector<8x128xf32>
    %c0_9 = arith.constant 0 : index
    %c0_10 = arith.constant 0 : index
    %7 = vector.load %arg6[%c0_9, %c0_10] : memref<8x1xf32, #tpu.memory_space<vmem>>, vector<8x1xf32>
    %8 = vector.broadcast %7 : vector<8x1xf32> to vector<8x128xf32>
    %9 = arith.mulf %6, %8 : vector<8x128xf32>
    %c0_11 = arith.constant 0 : index
    %c0_12 = arith.constant 0 : index
    %10 = vector.load %arg7[%c0_11, %c0_12] : memref<8x1xf32, #tpu.memory_space<vmem>>, vector<8x1xf32>
    %11 = vector.broadcast %10 : vector<8x1xf32> to vector<8x128xf32>
    %12 = arith.addf %9, %11 : vector<8x128xf32>
    %c0_13 = arith.constant 0 : index
    %c0_14 = arith.constant 0 : index
    %13 = vector.load %arg8[%c0_13, %c0_14] : memref<8x4xf32, #tpu.memory_space<vmem>>, vector<8x4xf32>
    %cst_15 = arith.constant dense<0.000000e+00> : vector<8x64xf32>
    %14 = tpu.matmul %13, %3, %cst_15 {dimension_numbers = #tpu.dot_dimension_numbers<[1], [0], [0], [1], [0, 0, 1, 1], [], []>} : vector<8x4xf32>, vector<4x64xf32>, vector<8x64xf32> -> vector<8x64xf32>
    %c0_16 = arith.constant 0 : index
    %c0_17 = arith.constant 0 : index
    %15 = vector.load %arg9[%c0_16, %c0_17] : memref<8x1xf32, #tpu.memory_space<vmem>>, vector<8x1xf32>
    %16 = vector.broadcast %15 : vector<8x1xf32> to vector<8x64xf32>
    %17 = arith.mulf %14, %16 : vector<8x64xf32>
    %c0_18 = arith.constant 0 : index
    %c0_19 = arith.constant 0 : index
    %18 = vector.load %arg10[%c0_18, %c0_19] : memref<8x1xf32, #tpu.memory_space<vmem>>, vector<8x1xf32>
    %19 = vector.broadcast %18 : vector<8x1xf32> to vector<8x64xf32>
    %20 = arith.addf %17, %19 : vector<8x64xf32>
    %cst_20 = arith.constant dense<0.000000e+00> : vector<8x128xf32>
    %21 = tpu.matmul %20, %4, %cst_20 {dimension_numbers = #tpu.dot_dimension_numbers<[1], [0], [0], [1], [0, 0, 1, 1], [], []>} : vector<8x64xf32>, vector<64x128xf32>, vector<8x128xf32> -> vector<8x128xf32>
    %22 = arith.mulf %12, %21 : vector<8x128xf32>
    %cst_21 = arith.constant dense<0.000000e+00> : vector<128xf32>
    %23 = vector.multi_reduction <add>, %22, %cst_21 [0] : vector<8x128xf32> to vector<128xf32>
    %24 = vector.shape_cast %23 : vector<128xf32> to vector<1x128xf32>
    %cst_22 = arith.constant 0.000000e+00 : f32
    %25 = vector.broadcast %cst_22 : f32 to vector<1x128xf32>
    %26 = arith.subf %25, %24 : vector<1x128xf32>
    %27 = math.exp %26 : vector<1x128xf32>
    %cst_23 = arith.constant 1.000000e+00 : f32
    %28 = vector.broadcast %cst_23 : f32 to vector<1x128xf32>
    %29 = arith.addf %28, %27 : vector<1x128xf32>
    %cst_24 = arith.constant 1.000000e+00 : f32
    %30 = vector.broadcast %cst_24 : f32 to vector<1x128xf32>
    %31 = arith.divf %30, %29 : vector<1x128xf32>
    %cst_25 = arith.constant dense<0.000000e+00> : vector<4x128xf32>
    %32 = tpu.matmul %3, %4, %cst_25 {dimension_numbers = #tpu.dot_dimension_numbers<[1], [0], [0], [1], [0, 0, 1, 1], [], []>} : vector<4x64xf32>, vector<64x128xf32>, vector<4x128xf32> -> vector<4x128xf32>
    %cst_26 = arith.constant 1.000000e+00 : f32
    %33 = vector.broadcast %cst_26 : f32 to vector<1x128xf32>
    %34 = arith.subf %33, %31 : vector<1x128xf32>
    %35 = vector.broadcast %34 : vector<1x128xf32> to vector<4x128xf32>
    %36 = arith.mulf %35, %1 : vector<4x128xf32>
    %37 = vector.broadcast %31 : vector<1x128xf32> to vector<4x128xf32>
    %38 = arith.mulf %37, %32 : vector<4x128xf32>
    %39 = arith.addf %36, %38 : vector<4x128xf32>
    %c0_27 = arith.constant 0 : index
    %c0_28 = arith.constant 0 : index
    %c0_29 = arith.constant 0 : index
    %40 = vector.load %arg11[%c0_27, %c0_28, %c0_29] : memref<1x4x128xf32, #tpu.memory_space<vmem>>, vector<1x4x128xf32>
    %41 = vector.shape_cast %40 : vector<1x4x128xf32> to vector<4x128xf32>
    %42 = vector.shape_cast %39 : vector<4x128xf32> to vector<1x4x128xf32>
    tpu.vector_store %arg11[%c0_27, %c0_28, %c0_29], %42 {strides = array<i32>} : memref<1x4x128xf32, #tpu.memory_space<vmem>>, vector<1x4x128xf32>,
    return
  }
  func.func @transform_0(%arg0: i32, %arg1: i32) -> (i32, i32, i32) {
    %c0_i32 = arith.constant 0 : i32
    %c0_i32_0 = arith.constant 0 : i32
    return %arg0, %c0_i32, %arg1 : i32, i32, i32
  }
  func.func @transform_1(%arg0: i32, %arg1: i32) -> (i32, i32, i32) {
    %c0_i32 = arith.constant 0 : i32
    %c0_i32_0 = arith.constant 0 : i32
    %c0_i32_1 = arith.constant 0 : i32
    return %arg0, %c0_i32, %c0_i32_0 : i32, i32, i32
  }
  func.func @transform_2(%arg0: i32, %arg1: i32) -> (i32, i32) {
    %c0_i32 = arith.constant 0 : i32
    %c0_i32_0 = arith.constant 0 : i32
    return %c0_i32, %arg1 : i32, i32
  }
  func.func @transform_3(%arg0: i32, %arg1: i32) -> (i32, i32) {
    %c0_i32 = arith.constant 0 : i32
    %c0_i32_0 = arith.constant 0 : i32
    %c0_i32_1 = arith.constant 0 : i32
    return %c0_i32, %c0_i32_0 : i32, i32
  }
  func.func @transform_4(%arg0: i32, %arg1: i32) -> (i32, i32) {
    %c0_i32 = arith.constant 0 : i32
    %c0_i32_0 = arith.constant 0 : i32
    %c0_i32_1 = arith.constant 0 : i32
    return %c0_i32, %c0_i32_0 : i32, i32
  }
  func.func @transform_5(%arg0: i32, %arg1: i32) -> (i32, i32) {
    %c0_i32 = arith.constant 0 : i32
    %c0_i32_0 = arith.constant 0 : i32
    %c0_i32_1 = arith.constant 0 : i32
    return %c0_i32, %c0_i32_0 : i32, i32
  }
  func.func @transform_6(%arg0: i32, %arg1: i32) -> (i32, i32) {
    %c0_i32 = arith.constant 0 : i32
    %c0_i32_0 = arith.constant 0 : i32
    %c0_i32_1 = arith.constant 0 : i32
    return %c0_i32, %c0_i32_0 : i32, i32
  }
  func.func @transform_7(%arg0: i32, %arg1: i32) -> (i32, i32) {
    %c0_i32 = arith.constant 0 : i32
    %c0_i32_0 = arith.constant 0 : i32
    %c0_i32_1 = arith.constant 0 : i32
    return %c0_i32, %c0_i32_0 : i32, i32
  }
  func.func @transform_8(%arg0: i32, %arg1: i32) -> (i32, i32) {
    %c0_i32 = arith.constant 0 : i32
    %c0_i32_0 = arith.constant 0 : i32
    %c0_i32_1 = arith.constant 0 : i32
    return %c0_i32, %c0_i32_0 : i32, i32
  }
  func.func @transform_9(%arg0: i32, %arg1: i32) -> (i32, i32, i32) {
    %c0_i32 = arith.constant 0 : i32
    %c0_i32_0 = arith.constant 0 : i32
    return %arg0, %c0_i32, %arg1 : i32, i32, i32
  }
}

</mosaic_0001>

<bundles_post_ra>
// kernel: tpu_custom_call.1
= control target key start
LH: loop header
LB: loop body
LE: loop exit
PB: predicated region body
PF: predicated region fallthrough
CT: control target
= control target key end

     0   :  { %s1271_s0 = inlined_call_operand.vmem [shape: f32[2,4,256], index: 0, kind: input, shape index: {}]   ;;  %s1272_s1 = inlined_call_operand.vmem [shape: f32[2,4,64], index: 1, kind: input, shape index: {}]   ;;  %s1273_s2 = inlined_call_operand.hbm [shape: f32[64,256], index: 2, kind: input, shape index: {}]   ;;  %s1274_s3 = inlined_call_operand.vmem [shape: f32[8,4], index: 3, kind: input, shape index: {}]   ;;  %s1275_s4 = inlined_call_operand.vmem [shape: f32[8,1], index: 4, kind: input, shape index: {}]   ;;  %s1276_s5 = inlined_call_operand.vmem [shape: f32[8,1], index: 5, kind: input, shape index: {}]   ;;  %s1277_s6 = inlined_call_operand.vmem [shape: f32[8,4], index: 6, kind: input, shape index: {}]   ;;  %s1278_s7 = inlined_call_operand.vmem [shape: f32[8,1], index: 7, kind: input, shape index: {}]   ;;  %s1279_s8 = inlined_call_operand.vmem [shape: f32[8,1], index: 8, kind: input, shape index: {}]   ;;  %s1280_s9 = inlined_call_operand.hbm [shape: f32[2,4,256], index: 9, kind: output, shape index: {}]  }
   0x1   :  { %1288 = sst [smem:[#allocation16_spill]] %s1276_s5 }
   0x2   :  { %1289 = sst [smem:[#allocation17_spill]] %s1280_s9 }
   0x3   :  { %14 = vsyncpa [#allocation3], 0 }
   0x4   :  { %16 = vsyncpa [#allocation3 + $0x1], 0 }
   0x5   :  { %17 = vsyncpa [#allocation4], 0 }
   0x6   :  { %19 = vsyncpa [#allocation4 + $0x1], 0  ;;  %s1059_s30 = smov 0   ;;  %s1061_s10 = smov 0  }
   0x7   :  { %s1063_s11 = smov 0   ;;  %s1065_s12 = smov 0  }
   0x8   :  { %s1067_s13 = smov 0   ;;  %s1069_s14 = smov 0  }
   0x9   :  { %s1071_s15 = smov 0   ;;  %s1073_s16 = smov 0  }
   0xa   :  { %s1075_s17 = smov 0   ;;  %s1077_s18 = smov 0  }
   0xb   :  { %s1079_s19 = smov 0  }
   0xc LB: > { %1290 = sst [smem:[#allocation8_spill]] %s963_s30  ;;  %s716_s20 = sadd.s32 4294967295, %s1003_s19   ;;  %s1003_s19 = sphi %s1079_s19, %s25_s19   ;;  %s999_s18 = sphi %s1077_s18, %s1312_s18   ;;  %s995_s17 = sphi %s1075_s17, %s1320_s17   ;;  %s991_s16 = sphi %s1073_s16, %s1319_s16   ;;  %s987_s15 = sphi %s1071_s15, %s1318_s15   ;;  %s983_s14 = sphi %s1069_s14, %s1317_s14   ;;  %s979_s13 = sphi %s1067_s13, %s1316_s13   ;;  %s975_s12 = sphi %s1065_s12, %s1315_s12   ;;  %s971_s11 = sphi %s1063_s11, %s1308_s11   ;;  %s967_s10 = sphi %s1061_s10, %s1314_s10   ;;  %s963_s30 = sphi %s1059_s30, %s1313_s30  }
   0xd   : > { %1291 = sst [smem:[#allocation9_spill]] %s971_s11  ;;  %s717_s21 = sadd.s32 4294967294, %s1003_s19  }
   0xe   : > { %1292 = sst [smem:[#allocation10_spill]] %s999_s18  ;;  %s34_s22 = sadd.s32 1, %s995_s17 }
   0xf   : > { %s37_s23 = sadd.s32 1, %s999_s18  ;;  %p35_p0 = scmp.ge.s32.totalorder %s34_s22, 2 }
  0x10   : > { %s98_s24 = sadd.s32 1, %s983_s14  ;;  %p105_p1 = scmp.ne.s32.totalorder %s983_s14, %s979_s13 }
  0x11   : > { %p106_p2 = scmp.eq.s32.totalorder %s1003_s19, 0  ;;  %s1322_s22 = smov (%p35_p0, %s34_s22), 0 }
  0x12   : > { %1293 = sst [smem:[#allocation11_spill]] %s1322_s22  ;;  %s1324_s23 = smov (!%p35_p0, %s37_s23), %s999_s18 }
  0x13   : > { %s95_s25 = ssub.s32 %s995_s17, %s1322_s22  ;;  %p1125_p3 = por %p106_p2, %p105_p1 }
  0x14   : > { %p39_p4 = scmp.ge.s32.totalorder %s1324_s23, 2  ;;  %p96_p5 = scmp.eq.s32.totalorder %s95_s25, 0 }
  0x15   : > { %p111_p6 = scmp.ne.s32.totalorder %s979_s13, %s975_s12  ;;  %p112_p7 = scmp.eq.s32.totalorder %s716_s20, 0 }
  0x16   : > { %s1326_s23 = smov (%p39_p4, %s1324_s23), 0  ;;  %s252_s9 = sadd.s32 1, %s971_s11 }
  0x17   : > { %1295 = sst [smem:[#allocation12_spill]] %s1326_s23  ;;  %p1135_p8 = por %p112_p7, %p111_p6 }
  0x18   : > { %s1133_s27 = scalar_select %p96_p5, %s983_s14, %s98_s24  }
  0x19   : > { %s247_s29 = ssub.s32 %s999_s18, %s1326_s23  ;;  %p262_p10 = scmp.ne.s32.totalorder %s971_s11, %s967_s10 }
  0x1a   : > { %1296 = sst [smem:[#allocation13_spill]] %s1133_s27  ;;  %s249_s22 = sor.u32 %s247_s29, %s95_s25 }
  0x1b   : > { %p250_p9 = scmp.eq.s32.totalorder %s249_s22, 0  ;;  %p263_p11 = scmp.eq.s32.totalorder %s716_s20, 3 }
  0x1c   : > { %p268_p12 = scmp.ne.s32.totalorder %s967_s10, %s963_s30  ;;  %p269_p0 = scmp.eq.s32.totalorder %s717_s21, 3 }
  0x1d   : > { %s1147_s12 = scalar_select %p250_p9, %s971_s11, %s252_s9  }
  0x1e   : > { %p1149_p13 = por %p263_p11, %p262_p10  ;;  %p751_p1 = scmp.lt.s32.totalorder %s1003_s19, 4 }
  0x1f   : > { %1298 = sst [smem:[#allocation14_spill]] %s1147_s12  ;;  %p1154_p2 = por %p269_p0, %p268_p12 }
  0x20   : > { %s325_s25 = sand.u32 1, %s983_s14   ;;  %s721_s29 = sshll.u32 %s995_s17, 3 }
  0x21   : > { %s1300_s24 = scalar_select %p1154_p2, 1, 0 }
  0x22   : > { %s720_s22 = sshll.u32 %s325_s25, 6  ;;  %s333_s9 = scalar_lea.hbm %s1273_s2, %s721_s29 }
  0x23   : > { %1301 = sst [smem:[#allocation15_spill]] %s1300_s24  ;;  %s329_s18 = scalar_lea.vmem [#allocation2], %s720_s22 }
  0x24   : > { %s336_s27 = sshll.u32 %s329_s18, 4  ;;  %s334_s12 = sshll.u32 %s333_s9, 4  ;;  %s337_s27 = int_to_ptr.vmem [resolvable:$true] %s336_s27  ;;  %s335_s12 = int_to_ptr.hbm [resolvable:$true] %s334_s12 }
  0x25   : > { %p744_p4 = pnand %p751_p1, %p1125_p3  ;;  %s326_s21 = scalar_lea.sflag [#allocation3], %s325_s25 }
  0x26   : > { %s1005_s11 = smov 256   ;;  %s1006_s30 = smov 128  }
  0x27   : > { %s1007_s24 = smov 8   ;;  %p722_p5 = scmp.ge.s32.totalorder %s1003_s19, 1 }
  0x28   : > { %746 = dma.hbm_to_vmem [thread:$0]  (!%p744_p4), %s335_s12, 1024, %s337_s27, %s326_s21, %s1005_s11, %s1006_s30, %s1007_s24  }
  0x29   : > { %p344_p6 = scmp.lt.s32.totalorder %s1003_s19, 5 }
  0x2b   : > { %p345_p7 = pnand %p722_p5, %p344_p6 }
  0x2c   : > { %s350_s23 = sand.u32 (!%p345_p7), 1, %s979_s13  }
  0x2d   : > { %348 = sbr.rel (%p345_p7) target bundleno = 374 (0x176), region = 56  ;;  %s723_s29 = sshll.u32 (!%p345_p7), %s350_s23, 6 }
  0x2e   : > { %s351_s22 = scalar_lea.sflag (!%p345_p7), [#allocation3], %s350_s23  ;;  %s1168_s18 = scalar_lea.vmem (!%p345_p7), [#allocation2], %s723_s29 }
  0x32   : > { %954 = dma.done.wait (%p1135_p8), %s351_s22, 1024  }
  0x33   : > { %956 = vsyncadd (%p1135_p8), %s351_s22, 4294966272  ;;  %p402_p3 = scmp.lt.s32.totalorder %s991_s16, 1  ;;  %v1008_v0 = vmov 0   ;;  %vm429_vm0 = vcmask 1043456   ;;  %vm425_vm1 = vcmask 31744   ;;  %v494_v1 = vld [vmem:[%s1278_s7] sm:$0xff] }
  0x34   : > { %845 = vset.pattern.permute.xlu0 %v1008_v0  ;;  %846 = vset.pattern.permute.xlu1 %v1008_v0  ;;  %v467_v3 = vld [vmem:[%s1277_s6] sm:$0xff]  ;;  %p404_p8 = scmp.lt.s32.totalorder %s987_s15, 1  ;;  %v423_v5 = vld [vmem:[%s1168_s18 + $0x38] sm:$0xff]  ;;  %v422_v6 = vld [vmem:[%s1168_s18 + $0x30] sm:$0xff]  ;;  %vm508_vm2 = vcmask 523264   ;;  %s1302_s21 = sld [smem:[#allocation16_spill]] }
  0x35   : > { %s403_s30 = scalar_select %p402_p3, %s991_s16, 1  ;;  %497 = vperm.xlu0 %845, %v494_v1   ;;  %v501_v4 = vld [vmem:[%s1279_s8] sm:$0xff]  ;;  %520 = vmatpush.msra.mxu2 %v423_v5  ;;  %v421_v7 = vld [vmem:[%s1168_s18 + $0x28] sm:$0xff]  ;;  %v419_v10 = vld [vmem:[%s1168_s18 + $0x18] sm:$0xff] }
  0x36   : > { %s405_s23 = scalar_select %p404_p8, %s987_s15, 1  ;;  %568 = vmatpush.msra.mxu3 %v423_v5  ;;  %v420_v8 = vld [vmem:[%s1168_s18 + $0x20] sm:$0xff]  ;;  %v418_v12 = vld [vmem:[%s1168_s18 + $0x10] sm:$0xff]  ;;  %v417_v13 = vld [vmem:[%s1168_s18 + $0x8] sm:$0xff] }
  0x37   : > { %s727_s11 = sshll.u32 %s403_s30, 2  ;;  %s725_s29 = sshll.u32 %s403_s30, 1  ;;  %521 = vmatpush.msra.mxu2 %v422_v6  ;;  %v424_v11 = vld [vmem:[%s1274_s3] sm:$0xff] }
  0x38   : > { %s413_s12 = scalar_lea.vmem %s1272_s1, %s727_s11  ;;  %s407_s22 = sadd.s32 %s725_s29, %s405_s23  ;;  %569 = vmatpush.msra.mxu3 %v422_v6  ;;  %v453_v14 = vld [vmem:[%s1275_s4] sm:$0xff] }
  0x39   : > { %v415_v2 = vld [vmem:[%s413_s12] sm:$0xf]  ;;  %s726_s11 = sshll.u32 %s407_s22, 2  ;;  %522 = vmatpush.msra.mxu2 %v421_v7  ;;  %456 = vperm.xlu1 %846, %v453_v14   ;;  %s399_s23 = sand.u32 1, %s967_s10  }
  0x3a   : > { %730 = vmatpush.msk.msra.mxu1 %vm429_vm0, %v415_v2  ;;  %s409_s12 = scalar_lea.vmem %s1271_s0, %s726_s11  ;;  %570 = vmatpush.msra.mxu3 %v421_v7  ;;  %v416_v15 = vld [vmem:[%s1168_s18] sm:$0xff]  ;;  %s735_s18 = sshll.u32 %s991_s16, 1 }
  0x3b   : > { %731 = vmatmul.msk.f32.vlgmr.msra.gmra.mxu1 %vm425_vm1, %v467_v3  ;;  %523 = vmatpush.msra.mxu2 %v420_v8  ;;  %v1199_v9 = vld [vmem:[%s409_s12] sm:$0xf]  ;;  %s596_s29 = sadd.s32 %s987_s15, %s735_s18  ;;  %s724_s22 = sshll.u32 %s399_s23, 2 }
  0x3c   : > { %571 = vmatpush.msra.mxu3 %v420_v8  ;;  %728 = vmatpush.msk.msra.mxu0 %vm429_vm0, %v1199_v9  ;;  %v460_v16 = vld [vmem:[%s1302_s21] sm:$0xff]  ;;  %s736_s11 = sshll.u32 %s596_s29, 2  ;;  %s1303_s12 = sld [smem:[#allocation17_spill]] }
  0x3d   : > { %504 = vperm.xlu0 %845, %v501_v4   ;;  %524 = vmatpush.msra.mxu2 %v419_v10  ;;  %s401_s15 = scalar_lea.vmem [#allocation5], %s724_s22  ;;  %s586_s25 = scalar_lea.sflag [#allocation4], %s399_s23 }
  0x3e   : > { %729 = vmatmul.msk.f32.vlgmr.msra.gmra.mxu0 %vm425_vm1, %v424_v11  ;;  %572 = vmatpush.msra.mxu3 %v419_v10  ;;  %s600_s30 = sshll.u32 %s401_s15, 4  ;;  %s601_s30 = int_to_ptr.vmem [resolvable:$true] %s600_s30 }
  0x3f   : > { %525 = vmatpush.msra.mxu2 %v418_v12 }
  0x40   : > { %573 = vmatpush.msra.mxu3 %v418_v12 }
  0x41   : > { %526 = vmatpush.msra.mxu2 %v417_v13  ;;  %463 = vperm.xlu1 %846, %v460_v16  }
  0x42   : > { %574 = vmatpush.msra.mxu3 %v417_v13  ;;  %s1304_s28 = smov %s1303_s12  ;;  %s598_s16 = scalar_lea.hbm %s1303_s12, %s736_s11 }
  0x43   : > { %527 = vmatpush.msra.mxu2 %v416_v15  ;;  %s602_s24 = sshll.u32 %s598_s16, 4  ;;  %s901_s29 = scalar_lea.hbm %s1304_s28, 16  ;;  %s603_s24 = int_to_ptr.hbm [resolvable:$true] %s602_s24 }
  0x44   : > { %575 = vmatpush.msra.mxu3 %v416_v15  ;;  %s895_s20 = sshra.s32 %s603_s24, 4  ;;  %s896_s20 = int_to_ptr.hbm [resolvable:$true] %s895_s20 }
  0x45   : > { %733 = vmatmul.msk.f32.vlgmr.msra.gmra.mxu3 %vm508_vm2, %v415_v2  ;;  %s897_s9 = scalar_lea.hbm %s896_s20, 4  ;;  %p902_p12 = scmp.lt.s32.totalorder %s896_s20, %s1304_s28 }
  0x46   : > { %p898_p9 = scmp.ne.s32.totalorder %s896_s20, %s897_s9  ;;  %p903_p0 = scmp.lt.s32.totalorder %s901_s29, %s897_s9 }
  0x48   : > { %p899_p10 = pnand %p898_p9, %p1149_p13  ;;  %p904_p1 = por %p903_p0, %p902_p12 }
  0x4a   : > { %p900_p11 = pneg %p899_p10 }
  0x4c   : > { %p905_p4 = pnand %p904_p1, %p900_p11 }
  0xa7   : > { %v498_v17 = vpop.permute.xlu0 %497 }
  0xab   : > { %v457_v22 = vpop.permute.xlu1 %456 }
  0xaf   : > { %v505_v20 = vpop.permute.xlu0 %504 }
  0xb3   : > { %v464_v25 = vpop.permute.xlu1 %463 }
  0xb8   : > { %v491_v18 = vpop.f32.mrf.mxu1 }
  0xb9   : > { %v500_v19 = vmul.f32 %v498_v17, %v491_v18 }
  0xbb   : > { %v507_v21 = vadd.f32 %v505_v20, %v500_v19  ;;  %v450_v23 = vpop.f32.mrf.mxu0 }
  0xbc   : > { %v459_v24 = vmul.f32 %v457_v22, %v450_v23 }
  0xbd   : > { %732 = vmatmul.msk.f32.vlgmr.msra.gmra.mxu2 %vm508_vm2, %v507_v21 }
  0xbe   : > { %v466_v26 = vadd.f32 %v464_v25, %v459_v24 }
  0xc8   : > { %v577_v49 = vpop.f32.mrf.mxu3 }
 0x140   : > { %v529_v27 = vpop.f32.mrf.mxu2 }
 0x141   : > { %v532_v28 = vmul.f32 %v529_v27, %v466_v26 }
 0x143   : > { %v533_v29 = vrot.slane %v532_v28, 4 }
 0x145   : > { %v534_v30 = vadd.f32 %v533_v29, %v532_v28 }
 0x147   : > { %v535_v31 = vrot.slane %v534_v30, 2 }
 0x149   : > { %v536_v32 = vadd.f32 %v535_v31, %v534_v30 }
 0x14b   : > { %v537_v33 = vrot.slane %v536_v32, 1 }
 0x14d   : > { %v538_v34 = vadd.f32 %v537_v33, %v536_v32 }
 0x14f   : > { %v539_v35 = vsub.f32 0.0, %v538_v34 }
 0x151   : > { %v540_v36 = vmul.f32 1.442695, %v539_v35 }
 0x153   : > { %847 = vpow2.f32 %v540_v36 }
 0x159   : > { %v848_v37 = vpop.eup %847 }
 0x15a   : > { %v542_v38 = vadd.f32 1.0, %v848_v37 }
 0x15c   : > { %849 = vrcp.f32 %v542_v38  ;;  %v554_v42 = vand.u32 2147483648, %v542_v38  ;;  %v552_v44 = vand.u32 2147483647, %v542_v38  ;;  %vm548_vm4 = vweird.f32 %v542_v38 }
 0x15e   : > { %v555_v46 = vor.u32 1.1754944e-38, %v554_v42  ;;  %vm553_vm6 = vcmp.eq.f32.partialorder %v552_v44, 8.507059e+37 }
 0x162   : > { %v850_v39 = vpop.eup %849 }
 0x163   : > { %v544_v40 = vmul.f32 %v850_v39, %v542_v38  ;;  %vm549_vm3 = vweird.f32 %v850_v39 }
 0x164   : > { %vm550_vm5 = vmor %vm548_vm4, %vm549_vm3 }
 0x165   : > { %v545_v41 = vsub.f32 1.0, %v544_v40 }
 0x167   : > { %v546_v43 = vmul.f32 %v850_v39, %v545_v41 }
 0x169   : > { %v547_v45 = vadd.f32 %v850_v39, %v546_v43 }
 0x16b   : > { %v551_v47 = vsel %vm550_vm5, %v850_v39, %v547_v45 }
 0x16c   : > { %v556_v48 = vsel %vm553_vm6, %v555_v46, %v551_v47 }
 0x16d   : > { %v580_v50 = vsub.f32 1.0, %v556_v48  ;;  %v582_v52 = vmul.f32 %v577_v49, %v556_v48 }
 0x16f   : > { %v581_v51 = vmul.f32 %v580_v50, %v1199_v9 }
 0x171   : > { %v583_v53 = vadd.f32 %v582_v52, %v581_v51 }
 0x173   : > { %584 = vst [vmem:[%s401_s15] sm:$0xf] %v583_v53 }
 0x174   : > { %908 = shalt.err (!%p905_p4)
}
 0x175   : > { %741 = dma.vmem_to_hbm [thread:$0]  (%p1149_p13), %s601_s30, 64, %s603_s24, %s586_s25  }
 0x176 PF: > { %s1305_s23 = sld [smem:[#allocation8_spill]]  ;;  %p752_p5 = scmp.ge.s32.totalorder %s1003_s19, 2 }
 0x178   : > { %p748_p6 = pnand %p752_p5, %p1154_p2 }
 0x17a   : > { %p749_p7 = pneg %p748_p6 }
 0x17c   : > { %s614_s27 = sand.u32 1, %s1305_s23  }
 0x17d   : > { %s615_s12 = scalar_lea.sflag [#allocation4], %s614_s27 }
 0x17e   : > { %958 = dma.done.wait (%p749_p7), %s615_s12, 64  }
 0x17f   : > { %960 = vsyncadd (%p749_p7), %s615_s12, 4294967232  ;;  %s25_s19 = sadd.s32 1, %s1003_s19   ;;  %s1307_s16 = sld [smem:[#allocation9_spill]] }
 0x180   : > { %p22_p3 = scmp.ge.s32.totalorder %s25_s19, 6   ;;  %s1308_s11 = sld [smem:[#allocation14_spill]] }
 0x181   : > { %s1309_s5 = sld [smem:[#allocation13_spill]]  ;;  %s1313_s30 = smov %s967_s10 }
 0x182   : > { %s1310_s24 = sld [smem:[#allocation10_spill]]  ;;  %s1315_s12 = smov %s979_s13 }
 0x183   : > { %s1311_s25 = sld [smem:[#allocation11_spill]]  ;;  %s1316_s13 = smov %s983_s14 }
 0x184   : > { %s1312_s18 = sld [smem:[#allocation12_spill]]  ;;  %s1318_s15 = smov %s995_s17 }
 0x185   : > { %s1314_s10 = smov %s1307_s16  ;;  %24 = sbr.rel (!%p22_p3) target bundleno = 12 (0xc), region = 107 }
 0x187   : > { %s1317_s14 = smov %s1309_s5 }
 0x188   : > { %s1319_s16 = smov %s1310_s24 }
 0x189   : > { %s1320_s17 = smov %s1311_s25 }
 0x18a   :  { %621 = vsyncpa [#allocation3], 1 }
 0x18b   :  { %623 = vsyncpa [#allocation3 + $0x1], 1 }
 0x18c   :  { %624 = vsyncpa [#allocation4], 1 }
 0x18d   :  { %626 = vsyncpa [#allocation4 + $0x1], 1 }

</bundles_post_ra>
